<compile_context>
chip_gen: v7x
topology: tpu7x:2x2x1
jax: 0.10.0
libtpu: 0.0.40
codegen_flags: <defaults>
</compile_context>

<pallas_src>
import functools

import numpy as np
import jax
import jax.numpy as jnp
from jax.experimental import pallas as pl
from jax.experimental.pallas import tpu as pltpu


# ----------------------------- Pallas kernel -----------------------------

def up_kernel(c_ref, d_ref, u_ref, w_ref, b_ref, o_ref, taps_ref, *, ktaps):
    # c_ref   : (C_c, W_g)      zero-padded skip connection, G batches per step,
    #                           each batch in its own Lp block of lanes.
    # d_ref   : (C_d, D_g)      low-res features for the G batches of this step.
    # u_ref   : (D_g, W_g)      per-group block-diagonal upsample matrix
    #                           (also applies the pad offset); VMEM-resident.
    # w_ref   : (OP, K*C_tot)   merged conv weights, tap-major flattened.
    # b_ref   : (OP, 1)         bias (rows past out_ch are zero).
    # o_ref   : (OP, W_g)       output in the padded lane layout.
    # taps_ref: (K*C_tot, W_g)  VMEM scratch holding the stacked tap blocks.
    lanes = c_ref.shape[1]

    # Linear upsample (+ implicit per-batch zero-pad + batch blocking) in one
    # MXU matmul against the reusable block-diagonal upsample block.
    d_up = jnp.dot(d_ref[...], u_ref[...], preferred_element_type=jnp.float32)

    # Merge skip (c) and upsampled (d) halves into one (C_tot, W_g) operand.
    x = jnp.concatenate([c_ref[...].astype(jnp.float32), d_up], axis=0)
    ctot = x.shape[0]

    # Tap k = x shifted left by k lanes (XLU roll, separate slot from VPU/MXU).
    # The circular wraparound only ever lands in discarded pad lanes.
    # Each tap block is exactly one aligned sublane group of the scratch.
    taps_ref[0:ctot, :] = x
    for k in range(1, ktaps):
        taps_ref[k * ctot:(k + 1) * ctot, :] = pltpu.roll(
            x, shift=lanes - k, axis=1)

    # One deep matmul over the whole K*C_tot contraction.
    acc = jnp.dot(w_ref[...], taps_ref[...], preferred_element_type=jnp.float32)

    # Bias once in the epilogue, tanh on the EUP, single full-width store.
    o_ref[...] = jnp.tanh(acc + b_ref[...]).astype(o_ref.dtype)


# ----------------------------- wrapper -----------------------------

def _round_up(x, m):
    return -(-x // m) * m


def up_forward(c, d, U, Wt, b, *, lane_target=1024):
    """c: (N, C_c, L), d: (N, C_d, L_in), U: (L_in, L),
    Wt: (out_ch, C_c + C_d, K) torch Conv1d weight layout, b: (out_ch,)
    -> (N, out_ch, L)."""
    N, C_c, L = c.shape
    _, C_d, L_in = d.shape
    out_ch, C_tot, K = Wt.shape
    assert C_tot == C_c + C_d and U.shape == (L_in, L)

    pad = K // 2
    Lp = L + 2 * pad
    # Conv windows of every kept output lane must stay inside its Lp block
    # (this is what makes the roll wraparound and inter-batch pads harmless).
    assert Lp >= L + (K - 1)

    # Batch-group tiling: G batches per grid step, ~lane_target lanes per step.
    G = max(1, min(N, lane_target // Lp if Lp <= lane_target else 1))
    num_groups = -(-N // G)
    N_pad = num_groups * G
    W_g = _round_up(G * Lp, 128)       # lane width per group (c / U cols / out)
    D_g = _round_up(G * L_in, 128)     # upsample contraction width per group
    OP = _round_up(out_ch, 8)          # sublane-dense output rows
    assert W_g >= G * Lp and D_g >= G * L_in

    f32 = jnp.float32

    # ---- layout plumbing (wrapper side only) ----
    # c: (N, C_c, L) -> per-group, per-batch zero-padded lane blocks.
    c_p = jnp.pad(c, ((0, N_pad - N), (0, 0), (pad, pad)))      # (N_pad, C_c, Lp)
    c_p = c_p.reshape(num_groups, G, C_c, Lp).transpose(0, 2, 1, 3)
    c_p = c_p.reshape(num_groups, C_c, G * Lp)
    c_p = jnp.pad(c_p, ((0, 0), (0, 0), (0, W_g - G * Lp)))
    c_p = c_p.transpose(1, 0, 2).reshape(C_c, num_groups * W_g)

    # d: (N, C_d, L_in) -> batches concatenated within each group, lane-padded.
    d_c = jnp.pad(d, ((0, N_pad - N), (0, 0), (0, 0)))          # (N_pad, C_d, L_in)
    d_c = d_c.reshape(num_groups, G, C_d, L_in).transpose(0, 2, 1, 3)
    d_c = d_c.reshape(num_groups, C_d, G * L_in)
    d_c = jnp.pad(d_c, ((0, 0), (0, 0), (0, D_g - G * L_in)))
    d_c = d_c.transpose(1, 0, 2).reshape(C_d, num_groups * D_g)

    # Per-group block-diagonal upsample matrix: local batch m's L_in rows land
    # in its own Lp lane block, shifted by `pad` (so d_up comes out already
    # zero-padded).  Built with jnp ops (static offsets) -> safe under jit.
    Uf = U.astype(f32)
    Ug = jnp.zeros((D_g, W_g), f32)
    for m in range(G):
        Ug = Ug.at[m * L_in:(m + 1) * L_in,
                   m * Lp + pad:m * Lp + pad + L].set(Uf)

    # Merged, tap-major flattened conv weights; rows zero-padded to OP.
    Wf = jnp.transpose(Wt, (0, 2, 1)).reshape(out_ch, K * C_tot).astype(f32)
    Wf = jnp.pad(Wf, ((0, OP - out_ch), (0, 0)))
    bp = jnp.pad(b.reshape(-1).astype(f32), (0, OP - out_ch)).reshape(OP, 1)

    # TODO(synk): cast MXU operands (c_p, d_c, Ug, Wf) to bf16 with f32
    # accumulation on v6e/v7x once the accuracy budget allows; halves DMA
    # bytes and hits the native-bf16 MXU.

    kern = functools.partial(up_kernel, ktaps=K)

    y_pad = pl.pallas_call(
        kern,
        out_shape=jax.ShapeDtypeStruct((OP, num_groups * W_g), c.dtype),
        grid=(num_groups,),
        in_specs=[
            pl.BlockSpec((C_c, W_g), lambda g: (0, g)),       # c      (advances)
            pl.BlockSpec((C_d, D_g), lambda g: (0, g)),       # d      (advances)
            pl.BlockSpec((D_g, W_g), lambda g: (0, 0)),       # U blk  (resident)
            pl.BlockSpec((OP, K * C_tot), lambda g: (0, 0)),  # W      (resident)
            pl.BlockSpec((OP, 1), lambda g: (0, 0)),          # bias   (resident)
        ],
        out_specs=pl.BlockSpec((OP, W_g), lambda g: (0, g)),
        scratch_shapes=[pltpu.VMEM((K * C_tot, W_g), f32)],
        compiler_params=pltpu.CompilerParams(
            dimension_semantics=("parallel",),
            vmem_limit_bytes=32 * 1024 * 1024),
    )(c_p, d_c, Ug, Wf, bp)

    # Back to (N, out_ch, L): output l for (group g, local batch m) lives at
    # lane g*W_g + m*Lp + l; only the first L lanes of each Lp block are valid.
    y = y_pad[:out_ch].reshape(out_ch, num_groups, W_g)[:, :, :G * Lp]
    y = y.reshape(out_ch, num_groups, G, Lp)[..., :L]
    y = y.reshape(out_ch, N_pad, L)[:, :N, :]
    return jnp.transpose(y, (1, 0, 2))


# ----------------------------- glue / reference -----------------------------

def upsample_matrix(L_in, L_out):
    """PyTorch Upsample(scale_factor=2, mode='linear', align_corners=True)
    expressed as a (L_in, L_out) matrix: out = x @ U."""
    U = np.zeros((L_in, L_out), dtype=np.float32)
    for i in range(L_out):
        src = 0.0 if L_out == 1 else i * (L_in - 1) / (L_out - 1)
        j0 = int(np.floor(src))
        j1 = min(j0 + 1, L_in - 1)
        frac = src - j0
        U[j0, i] += 1.0 - frac
        U[j1, i] += frac
    return jnp.asarray(U)


def up_reference(c, d, U, Wt, b):
    d_up = jnp.einsum('ncj,ji->nci', d, U)
    x = jnp.concatenate([c, d_up], axis=1)
    K = Wt.shape[-1]
    y = jax.lax.conv_general_dilated(
        x, Wt, window_strides=(1,), padding=((K // 2, K // 2),),
        dimension_numbers=('NCH', 'OIH', 'NCH'))
    return jnp.tanh(y + b.reshape(1, -1, 1))


if __name__ == "__main__":
    # Module config: Up(in_ch=4, out_ch=4, lin=True)
    in_ch, out_ch, K = 4, 4, 5
    N, L_in = 2, 8
    L = 2 * L_in                    # upsample scale_factor=2
    C_c, C_d = in_ch, in_ch         # concat channels = 2*in_ch = conv in-channels
    C_tot = C_c + C_d

    key = jax.random.PRNGKey(0)
    k1, k2, k3, k4 = jax.random.split(key, 4)
    c = jax.random.normal(k1, (N, C_c, L), jnp.float32)
    d = jax.random.normal(k2, (N, C_d, L_in), jnp.float32)
    # Deterministic synthetic conv parameters, torch Conv1d layout (O, I, K).
    Wt = 0.1 * jax.random.normal(k3, (out_ch, C_tot, K), jnp.float32)
    b = 0.1 * jax.random.normal(k4, (out_ch,), jnp.float32)
    U = upsample_matrix(L_in, L)

    out = up_forward(c, d, U, Wt, b)
    out = jax.block_until_ready(out)

    ref = up_reference(c, d, U, Wt, b)
    np.testing.assert_allclose(np.asarray(out), np.asarray(ref),
                               rtol=1e-4, atol=1e-4)
    print("KERNEL_OK")
</pallas_src>

<mosaic_0001>
module attributes {stable_mosaic.version = 11 : i64} {
  func.func @up_kernel(%arg0: i32, %arg1: memref<4x128xf32, #tpu.memory_space<vmem>>, %arg2: memref<4x128xf32, #tpu.memory_space<vmem>>, %arg3: memref<128x128xf32, #tpu.memory_space<vmem>>, %arg4: memref<8x40xf32, #tpu.memory_space<vmem>>, %arg5: memref<8x1xf32, #tpu.memory_space<vmem>>, %arg6: memref<8x128xf32, #tpu.memory_space<vmem>>, %arg7: memref<40x128xf32, #tpu.memory_space<vmem>>) attributes {dimension_semantics = [#tpu.dimension_semantics<parallel>], iteration_bounds = array<i64: 1>, scalar_prefetch = 0 : i64, scratch_operands = 1 : i64, tpu.core_type = #tpu.core_type<tc>, window_params = [{transform_indices = @transform_0, window_bounds = array<i64: 4, 128>}, {transform_indices = @transform_1, window_bounds = array<i64: 4, 128>}, {pipeline_mode = #tpu.pipeline_mode<synchronous>, transform_indices = @transform_2, window_bounds = array<i64: 128, 128>}, {pipeline_mode = #tpu.pipeline_mode<synchronous>, transform_indices = @transform_3, window_bounds = array<i64: 8, 40>}, {pipeline_mode = #tpu.pipeline_mode<synchronous>, transform_indices = @transform_4, window_bounds = array<i64: 8, 1>}, {transform_indices = @transform_5, window_bounds = array<i64: 8, 128>}]} {
    %c0 = arith.constant 0 : index
    %c0_0 = arith.constant 0 : index
    %0 = vector.load %arg2[%c0, %c0_0] : memref<4x128xf32, #tpu.memory_space<vmem>>, vector<4x128xf32>
    %c0_1 = arith.constant 0 : index
    %c0_2 = arith.constant 0 : index
    %1 = vector.load %arg3[%c0_1, %c0_2] : memref<128x128xf32, #tpu.memory_space<vmem>>, vector<128x128xf32>
    %cst = arith.constant dense<0.000000e+00> : vector<4x128xf32>
    %2 = tpu.matmul %0, %1, %cst {dimension_numbers = #tpu.dot_dimension_numbers<[1], [0], [0], [1], [0, 0, 1, 1], [], []>} : vector<4x128xf32>, vector<128x128xf32>, vector<4x128xf32> -> vector<4x128xf32>
    %c0_3 = arith.constant 0 : index
    %c0_4 = arith.constant 0 : index
    %3 = vector.load %arg1[%c0_3, %c0_4] : memref<4x128xf32, #tpu.memory_space<vmem>>, vector<4x128xf32>
    %4 = tpu.concatenate %3, %2 in 0 : vector<4x128xf32>, vector<4x128xf32> -> vector<8x128xf32>
    %c0_5 = arith.constant 0 : index
    %c0_6 = arith.constant 0 : index
    %5 = vector.load %arg7[%c0_5, %c0_6] : memref<40x128xf32, #tpu.memory_space<vmem>>, vector<8x128xf32>
    tpu.vector_store %arg7[%c0_5, %c0_6], %4 {strides = array<i32>} : memref<40x128xf32, #tpu.memory_space<vmem>>, vector<8x128xf32>,
    %c127_i32 = arith.constant 127 : i32
    %6 = tpu.dynamic_rotate %4 by %c127_i32 dim 1 : vector<8x128xf32>, i32 -> vector<8x128xf32>
    %c8 = arith.constant 8 : index
    %c0_7 = arith.constant 0 : index
    %7 = vector.load %arg7[%c8, %c0_7] : memref<40x128xf32, #tpu.memory_space<vmem>>, vector<8x128xf32>
    tpu.vector_store %arg7[%c8, %c0_7], %6 {strides = array<i32>} : memref<40x128xf32, #tpu.memory_space<vmem>>, vector<8x128xf32>,
    %c126_i32 = arith.constant 126 : i32
    %8 = tpu.dynamic_rotate %4 by %c126_i32 dim 1 : vector<8x128xf32>, i32 -> vector<8x128xf32>
    %c16 = arith.constant 16 : index
    %c0_8 = arith.constant 0 : index
    %9 = vector.load %arg7[%c16, %c0_8] : memref<40x128xf32, #tpu.memory_space<vmem>>, vector<8x128xf32>
    tpu.vector_store %arg7[%c16, %c0_8], %8 {strides = array<i32>} : memref<40x128xf32, #tpu.memory_space<vmem>>, vector<8x128xf32>,
    %c125_i32 = arith.constant 125 : i32
    %10 = tpu.dynamic_rotate %4 by %c125_i32 dim 1 : vector<8x128xf32>, i32 -> vector<8x128xf32>
    %c24 = arith.constant 24 : index
    %c0_9 = arith.constant 0 : index
    %11 = vector.load %arg7[%c24, %c0_9] : memref<40x128xf32, #tpu.memory_space<vmem>>, vector<8x128xf32>
    tpu.vector_store %arg7[%c24, %c0_9], %10 {strides = array<i32>} : memref<40x128xf32, #tpu.memory_space<vmem>>, vector<8x128xf32>,
    %c124_i32 = arith.constant 124 : i32
    %12 = tpu.dynamic_rotate %4 by %c124_i32 dim 1 : vector<8x128xf32>, i32 -> vector<8x128xf32>
    %c32 = arith.constant 32 : index
    %c0_10 = arith.constant 0 : index
    %13 = vector.load %arg7[%c32, %c0_10] : memref<40x128xf32, #tpu.memory_space<vmem>>, vector<8x128xf32>
    tpu.vector_store %arg7[%c32, %c0_10], %12 {strides = array<i32>} : memref<40x128xf32, #tpu.memory_space<vmem>>, vector<8x128xf32>,
    %c0_11 = arith.constant 0 : index
    %c0_12 = arith.constant 0 : index
    %14 = vector.load %arg4[%c0_11, %c0_12] : memref<8x40xf32, #tpu.memory_space<vmem>>, vector<8x40xf32>
    %c0_13 = arith.constant 0 : index
    %c0_14 = arith.constant 0 : index
    %15 = vector.load %arg7[%c0_13, %c0_14] : memref<40x128xf32, #tpu.memory_space<vmem>>, vector<40x128xf32>
    %cst_15 = arith.constant dense<0.000000e+00> : vector<8x128xf32>
    %16 = tpu.matmul %14, %15, %cst_15 {dimension_numbers = #tpu.dot_dimension_numbers<[1], [0], [0], [1], [0, 0, 1, 1], [], []>} : vector<8x40xf32>, vector<40x128xf32>, vector<8x128xf32> -> vector<8x128xf32>
    %c0_16 = arith.constant 0 : index
    %c0_17 = arith.constant 0 : index
    %17 = vector.load %arg5[%c0_16, %c0_17] : memref<8x1xf32, #tpu.memory_space<vmem>>, vector<8x1xf32>
    %18 = vector.broadcast %17 : vector<8x1xf32> to vector<8x128xf32>
    %19 = arith.addf %16, %18 : vector<8x128xf32>
    %20 = math.tanh %19 : vector<8x128xf32>
    %c0_18 = arith.constant 0 : index
    %c0_19 = arith.constant 0 : index
    %21 = vector.load %arg6[%c0_18, %c0_19] : memref<8x128xf32, #tpu.memory_space<vmem>>, vector<8x128xf32>
    tpu.vector_store %arg6[%c0_18, %c0_19], %20 {strides = array<i32>} : memref<8x128xf32, #tpu.memory_space<vmem>>, vector<8x128xf32>,
    return
  }
  func.func @transform_0(%arg0: i32) -> (i32, i32) {
    %c0_i32 = arith.constant 0 : i32
    %c0_i32_0 = arith.constant 0 : i32
    return %c0_i32, %arg0 : i32, i32
  }
  func.func @transform_1(%arg0: i32) -> (i32, i32) {
    %c0_i32 = arith.constant 0 : i32
    %c0_i32_0 = arith.constant 0 : i32
    return %c0_i32, %arg0 : i32, i32
  }
  func.func @transform_2(%arg0: i32) -> (i32, i32) {
    %c0_i32 = arith.constant 0 : i32
    %c0_i32_0 = arith.constant 0 : i32
    %c0_i32_1 = arith.constant 0 : i32
    return %c0_i32, %c0_i32_0 : i32, i32
  }
  func.func @transform_3(%arg0: i32) -> (i32, i32) {
    %c0_i32 = arith.constant 0 : i32
    %c0_i32_0 = arith.constant 0 : i32
    %c0_i32_1 = arith.constant 0 : i32
    return %c0_i32, %c0_i32_0 : i32, i32
  }
  func.func @transform_4(%arg0: i32) -> (i32, i32) {
    %c0_i32 = arith.constant 0 : i32
    %c0_i32_0 = arith.constant 0 : i32
    %c0_i32_1 = arith.constant 0 : i32
    return %c0_i32, %c0_i32_0 : i32, i32
  }
  func.func @transform_5(%arg0: i32) -> (i32, i32) {
    %c0_i32 = arith.constant 0 : i32
    %c0_i32_0 = arith.constant 0 : i32
    return %c0_i32, %arg0 : i32, i32
  }
}

</mosaic_0001>

<bundles_post_ra>
// kernel: tpu_custom_call.1
= control target key start
LH: loop header
LB: loop body
LE: loop exit
PB: predicated region body
PF: predicated region fallthrough
CT: control target
= control target key end

     0   :  { %10 = vsyncpa [#allocation4], 0  ;;  %s500_s0 = inlined_call_operand.vmem [shape: f32[4,128], index: 0, kind: input, shape index: {}]   ;;  %s501_s1 = inlined_call_operand.vmem [shape: f32[4,128], index: 1, kind: input, shape index: {}]   ;;  %s502_s2 = inlined_call_operand.hbm [shape: f32[128,128], index: 2, kind: input, shape index: {}]   ;;  %s503_s3 = inlined_call_operand.vmem [shape: f32[8,40], index: 3, kind: input, shape index: {}]   ;;  %s504_s4 = inlined_call_operand.vmem [shape: f32[8,1], index: 4, kind: input, shape index: {}]   ;;  %s505_s5 = inlined_call_operand.hbm [shape: f32[8,128], index: 5, kind: output, shape index: {}]  }
   0x1   :  { %11 = vsyncpa [#allocation5], 0  ;;  %s409_s18 = smov [#allocation3]   ;;  %s361_s22 = scalar_lea.hbm %s502_s2, 2048 }
   0x2   :  { %s21_s19 = sshll.u32 %s409_s18, 4  ;;  %p362_p0 = scmp.ne.s32.totalorder %s502_s2, %s361_s22  ;;  %s22_s19 = int_to_ptr.vmem [resolvable:$true] %s21_s19 }
   0x3   :  { %p365_p1 = scmp.lt.u32.totalorder %s361_s22, %s502_s2 }
   0x5   :  { %p367_p2 = pnand %p365_p1, %p362_p0 }
   0x7   :  { %370 = shalt.err (!%p367_p2)
}
   0x8   :  { %s371_s27 = scalar_lea.vmem %s22_s19, 2048  ;;  %p376_p4 = scmp.lt.s32.totalorder %s22_s19, %s22_s19 }
   0x9   :  { %p372_p3 = scmp.ne.s32.totalorder %s22_s19, %s371_s27  ;;  %p377_p5 = scmp.lt.s32.totalorder %s371_s27, %s371_s27 }
   0xb   :  { %p378_p6 = por %p377_p5, %p376_p4 }
   0xd   :  { %p379_p7 = pnand %p378_p6, %p372_p3 }
   0xf   :  { %382 = shalt.err (!%p379_p7)
}
  0x10   :  { %s410_s28 = smov 128   ;;  %s411_s29 = smov 8  }
  0x11   :  { %27 = dma.hbm_to_vmem [thread:$0]  %s502_s2, 2048, %s22_s19, [#allocation4], %s410_s28, %s410_s28, %s411_s29  }
  0x12   :  { %405 = dma.done.wait [#allocation4], 2048  }
  0x13   :  { %406 = vsyncadd [#allocation4], 4294965248  ;;  %v412_v0 = vmov 0.0|0.0   ;;  %vm413_vm0 = vmmov 0   ;;  %v414_v1 = vmov 0.0   ;;  %v36_v2 = vld [vmem:[#allocation3] sm:$0xff] }
  0x14   :  { %316 = vmatprep.subr.bf16.mxu0 %v412_v0  ;;  %300 = vmatprep.mubr.msk.f32.mxu0 %vm413_vm0, %v414_v1  ;;  %v37_v3 = vld [vmem:[#allocation3 + $0x8] sm:$0xff]  ;;  %v38_v4 = vld [vmem:[#allocation3 + $0x10] sm:$0xff]  ;;  %v39_v6 = vld [vmem:[#allocation3 + $0x18] sm:$0xff]  ;;  %vm126_vm1 = vcmask 1043456   ;;  %v415_v32 = vmov 0   ;;  %s416_s10 = smov 125  }
  0x15   :  { %340 = vmatprep.subr.bf16.mxu1 %v412_v0  ;;  %313 = vmatprep.mubr.msk.f32.mxu1 %vm413_vm0, %v414_v1  ;;  %v317_v5 = vpack.c.bf16 %v37_v3, %v36_v2  ;;  %v320_v7 = vpack.c.bf16 %v39_v6, %v38_v4  ;;  %v40_v8 = vld [vmem:[#allocation3 + $0x20] sm:$0xff]  ;;  %v41_v9 = vld [vmem:[#allocation3 + $0x28] sm:$0xff]  ;;  %v42_v11 = vld [vmem:[#allocation3 + $0x30] sm:$0xff]  ;;  %s417_s11 = smov 127   ;;  %s418_s12 = smov 124   ;;  %vm153_vm2 = vcmask 326656  }
  0x16   :  { %v323_v10 = vpack.c.bf16 %v41_v9, %v40_v8  ;;  %v43_v12 = vld [vmem:[#allocation3 + $0x38] sm:$0xff]  ;;  %v44_v14 = vld [vmem:[#allocation3 + $0x40] sm:$0xff]  ;;  %v45_v15 = vld [vmem:[#allocation3 + $0x48] sm:$0xff]  ;;  %358 = vset.pattern.permute.xlu0 %v415_v32  ;;  %s419_s13 = smov 126  }
  0x17   :  { %318 = vmatpush3.bf16.msra.mxu0 %v317_v5  ;;  %v326_v13 = vpack.c.bf16 %v43_v12, %v42_v11  ;;  %v329_v16 = vpack.c.bf16 %v45_v15, %v44_v14  ;;  %v46_v17 = vld [vmem:[#allocation3 + $0x50] sm:$0xff]  ;;  %v47_v18 = vld [vmem:[#allocation3 + $0x58] sm:$0xff]  ;;  %v48_v20 = vld [vmem:[#allocation3 + $0x60] sm:$0xff] }
  0x18   :  { %319 = vmatprep.subr.bf16.mxu0 %v412_v0  ;;  %v332_v19 = vpack.c.bf16 %v47_v18, %v46_v17  ;;  %v49_v21 = vld [vmem:[#allocation3 + $0x68] sm:$0xff]  ;;  %v50_v23 = vld [vmem:[#allocation3 + $0x70] sm:$0xff]  ;;  %v51_v24 = vld [vmem:[#allocation3 + $0x78] sm:$0xff] }
  0x19   :  { %v335_v22 = vpack.c.bf16 %v49_v21, %v48_v20  ;;  %v338_v25 = vpack.c.bf16 %v51_v24, %v50_v23  ;;  %v35_v26 = vld [vmem:[%s501_s1] sm:$0xf] }
  0x1a   :  { %v122_v28 = vld [vmem:[%s500_s0] sm:$0xf] }
  0x1b   :  { %321 = vmatpush3.bf16.msra.mxu0 %v320_v7  ;;  %v147_v33 = vld [vmem:[%s504_s4] sm:$0xff]  ;;  %s420_s4 = smov [#allocation6]  }
  0x1c   :  { %322 = vmatprep.subr.bf16.mxu0 %v412_v0  ;;  %v141_v39 = vld [vmem:[%s503_s3] sm:$0xff]  ;;  %s235_s16 = sshll.u32 %s420_s4, 4  ;;  %s236_s16 = int_to_ptr.vmem [resolvable:$true] %s235_s16 }
  0x1d   :  { %s383_s17 = scalar_lea.vmem %s236_s16, 128  ;;  %p388_p9 = scmp.lt.s32.totalorder %s236_s16, %s236_s16 }
  0x1e   :  { %p384_p8 = scmp.ne.s32.totalorder %s236_s16, %s383_s17  ;;  %p389_p10 = scmp.lt.s32.totalorder %s383_s17, %s383_s17 }
  0x1f   :  { %324 = vmatpush3.bf16.msra.mxu0 %v323_v10 }
  0x20   :  { %325 = vmatprep.subr.bf16.mxu0 %v412_v0  ;;  %p390_p11 = por %p389_p10, %p388_p9 }
  0x22   :  { %p391_p12 = pnand %p390_p11, %p384_p8 }
  0x23   :  { %327 = vmatpush3.bf16.msra.mxu0 %v326_v13 }
  0x24   :  { %328 = vmatprep.subr.bf16.mxu0 %v412_v0 }
  0x27   :  { %330 = vmatpush3.bf16.msra.mxu0 %v329_v16 }
  0x28   :  { %331 = vmatprep.subr.bf16.mxu0 %v412_v0 }
  0x2b   :  { %333 = vmatpush3.bf16.msra.mxu0 %v332_v19 }
  0x2c   :  { %334 = vmatprep.subr.bf16.mxu0 %v412_v0 }
  0x2f   :  { %336 = vmatpush3.bf16.msra.mxu0 %v335_v22 }
  0x30   :  { %337 = vmatprep.subr.bf16.mxu0 %v412_v0 }
  0x33   :  { %339 = vmatpush3.bf16.msra.mxu0 %v338_v25 }
  0x36   :  { %301 = vmatmul.mubr.f32.vlgmr.msra.gmra.mrb[0].mxu0 %v35_v26 }
 0x109   :  { %v118_v27 = vpop.f32.mrb[0].mxu0 }
 0x10a   :  { %v124_v29 = vrot.slane %v118_v27, 4  ;;  %v302_v30 = vpop.f32.mrb[1].mxu0 }
 0x10c   :  { %v127_v31 = vsel %vm126_vm1, %v122_v28, %v124_v29 }
 0x10d   :  { %135 = vrot.lane.b32.xlu1 %v127_v31, %s416_s10  ;;  %129 = vrot.lane.b32.xlu0 %v127_v31, %s417_s11 }
 0x111   :  { %138 = vrot.lane.b32.xlu1 %v127_v31, %s418_s12  ;;  %132 = vrot.lane.b32.xlu0 %v127_v31, %s419_s13 }
 0x115   :  { %150 = vperm.xlu0 %358, %v147_v33  }
 0x17f   :  { %v130_v34 = vpop.permute.xlu0 %129  ;;  %v136_v36 = vpop.permute.xlu1 %135 }
 0x180   :  { %v341_v35 = vpack.c.bf16 %v130_v34, %v127_v31 }
 0x182   :  { %342 = vmatpush3.bf16.msra.mxu1 %v341_v35 }
 0x183   :  { %v133_v37 = vpop.permute.xlu0 %132  ;;  %343 = vmatprep.subr.bf16.mxu1 %v412_v0  ;;  %v139_v40 = vpop.permute.xlu1 %138 }
 0x184   :  { %v344_v38 = vpack.c.bf16 %v136_v36, %v133_v37 }
 0x186   :  { %345 = vmatpush3.bf16.msra.mxu1 %v344_v38 }
 0x187   :  { %311 = vmatprep.subr.mxu1 %v414_v1 }
 0x18a   :  { %312 = vmatpush3.msra.mxu1 %v139_v40 }
 0x18b   :  { %314 = vmatmul.mubr.msk.f32.vlgmr.msra.gmra.mrb[0].mxu1 %vm153_vm2, %v141_v39 }
 0x194   :  { %v151_v41 = vpop.permute.xlu0 %150 }
 0x25e   :  { %v223_v42 = vpop.f32.mrb[0].mxu1 }
 0x25f   :  { %v224_v43 = vadd.f32 %v223_v42, %v151_v41  ;;  %v315_v44 = vpop.f32.mrb[1].mxu1 }
 0x261   :  { %359 = vtanh.f32 %v224_v43 }
 0x26b   :  { %v360_v45 = vpop.eup %359 }
 0x26c   :  { %228 = vst [vmem:[#allocation6] sm:$0xff] %v360_v45 }
 0x26d   :  { %394 = shalt.err (!%p391_p12)
}
 0x26e   :  { %s395_s19 = scalar_lea.hbm %s505_s5, 128 }
 0x26f   :  { %p396_p13 = scmp.ne.s32.totalorder %s505_s5, %s395_s19  ;;  %p399_p0 = scmp.lt.u32.totalorder %s395_s19, %s505_s5 }
 0x271   :  { %p401_p1 = pnand %p399_p0, %p396_p13 }
 0x273   :  { %404 = shalt.err (!%p401_p1)
}
 0x274   :  { %238 = dma.vmem_to_hbm [thread:$0]  %s236_s16, 128, %s505_s5, [#allocation5]  }
 0x275   :  { %407 = dma.done.wait [#allocation5], 128  }
 0x276   :  { %408 = vsyncadd [#allocation5], 4294967168 }
 0x277   :  { %242 = vsyncpa [#allocation4], 1 }
 0x278   :  { %243 = vsyncpa [#allocation5], 1 }

</bundles_post_ra>
